<compile_context>
chip_gen: v7x
topology: tpu7x:2x2x1
jax: 0.10.0
libtpu: 0.0.40
codegen_flags: <defaults>
</compile_context>

<pallas_src>
import functools

import jax
import jax.numpy as jnp
from jax import lax
from jax.experimental import pallas as pl
from jax.experimental.pallas import tpu as pltpu


def _round_up(n, m):
    return (n + m - 1) // m * m


def _hypernet_kernel(x_ref, w1_ref, b1_ref, w2_ref, b2_ref, g_ref, beta_ref,
                     o_ref, *, eps, enable_layer_norm, n_valid):
    # x: [TB, K] input dtype; w1: [K, Hp] bf16; w2: [Hp, Ep] bf16.
    # bf16 x bf16 on the MXU with f32 accumulation; pointwise math in f32.
    x = x_ref[...].astype(jnp.bfloat16)
    h = jnp.dot(x, w1_ref[...], preferred_element_type=jnp.float32)
    h = jnp.maximum(h + b1_ref[...], 0.0)

    y = jnp.dot(h.astype(jnp.bfloat16), w2_ref[...],
                preferred_element_type=jnp.float32)
    y = y + b2_ref[...]

    if enable_layer_norm:
        if n_valid == y.shape[-1]:
            mean = jnp.mean(y, axis=-1, keepdims=True)
            c = y - mean
            var = jnp.mean(c * c, axis=-1, keepdims=True)
        else:
            # Output lane dim was padded. Padded lanes of y are exactly zero
            # (zero w2 pad columns, zero b2 pad), so the raw sum already
            # equals the masked sum; only the variance term needs the mask.
            lane = lax.broadcasted_iota(jnp.int32, y.shape, 1)
            mask = lane < n_valid
            inv_n = 1.0 / n_valid
            mean = jnp.sum(y, axis=-1, keepdims=True) * inv_n
            c = jnp.where(mask, y - mean, 0.0)
            var = jnp.sum(c * c, axis=-1, keepdims=True) * inv_n
        y = c * lax.rsqrt(var + eps)
        y = y * g_ref[...] + beta_ref[...]

    o_ref[...] = y.astype(o_ref.dtype)


def prepare_params(params, *, weight_dtype=jnp.bfloat16):
    """One-time padding/casting of the module params to TPU-tile shapes.

    w1 keeps its K rows (K=96 is sublane-aligned and a full-dim block is
    legal); only the lane dims (H, E) are padded to 128.  Zero pads are exact
    through ReLU / the second matmul / LayerNorm affine.
    """
    w1, b1 = params["w1"], params["b1"]
    w2, b2 = params["w2"], params["b2"]
    gamma, beta = params["gamma"], params["beta"]

    K, H = w1.shape
    E = w2.shape[1]
    Hp, Ep = _round_up(H, 128), _round_up(E, 128)

    def pad2(a, shape, dtype):
        out = jnp.zeros(shape, dtype)
        return out.at[: a.shape[0], : a.shape[1]].set(a.astype(dtype))

    def pad_row(a, n, dtype):
        out = jnp.zeros((1, n), dtype)
        return out.at[0, : a.shape[0]].set(a.astype(dtype))

    return {
        "w1": pad2(w1, (K, Hp), weight_dtype),
        "b1": pad_row(b1, Hp, jnp.float32),      # zero pad -> ReLU(0)=0, inert
        "w2": pad2(w2, (Hp, Ep), weight_dtype),  # zero rows/cols -> inert
        "b2": pad_row(b2, Ep, jnp.float32),
        "gamma": pad_row(gamma, Ep, jnp.float32),
        "beta": pad_row(beta, Ep, jnp.float32),
        "dims": (K, H, E),                       # logical sizes (static ints)
    }


def task_embedding_hypernet(task_embedding, prepared, *, eps=1e-12,
                            enable_task_layer_norm=True, block_b=1024,
                            out_dtype=None):
    """Forward pass of TaskEmbeddingHyperNet via a single fused Pallas kernel."""
    K, H, E = prepared["dims"]
    B, Kx = task_embedding.shape
    assert Kx == K, f"expected last dim {K}, got {Kx}"

    _, Hp = prepared["w1"].shape
    Ep = prepared["w2"].shape[1]
    out_dtype = task_embedding.dtype if out_dtype is None else out_dtype

    # Batch tile: sublane-aligned, big enough to amortize the ~0.35us/step
    # grid overhead (sweep block_b: 1024-2048 typical, larger on v7x).
    TB = min(_round_up(B, 8), max(8, block_b))
    # v7x megacore: for large batches keep >=2 grid steps so the "parallel"
    # batch axis shards across both TensorCores (no-op for small B).
    if B >= 2048 and pl.cdiv(B, TB) < 2:
        TB = _round_up(pl.cdiv(B, 2), 8)

    grid = (pl.cdiv(B, TB),)  # ragged last block: OOB output writes dropped

    x_itemsize = jnp.dtype(task_embedding.dtype).itemsize
    o_itemsize = jnp.dtype(out_dtype).itemsize

    cost = pl.CostEstimate(
        flops=2 * B * (K * Hp + Hp * Ep),
        transcendentals=B if enable_task_layer_norm else 0,
        bytes_accessed=B * K * x_itemsize            # x (no wrapper pad pass)
        + (K * Hp + Hp * Ep) * 2                     # bf16 weights
        + (Hp + 3 * Ep) * 4                          # f32 bias / LN params
        + B * Ep * o_itemsize,                       # output
    )

    # Rough per-step VMEM: double-buffered x/out tiles + resident weights +
    # f32 h/y staging.  Only raise the scoped limit when we would trip the
    # 16 MiB default (v5e) at very large TB.
    vmem_est = (2 * TB * K * x_itemsize + 2 * TB * Ep * o_itemsize
                + (K * Hp + Hp * Ep) * 2 + (Hp + 3 * Ep) * 4
                + TB * (Hp + Ep) * 4)
    cp_kwargs = dict(dimension_semantics=("parallel",))
    if vmem_est > 12 * 1024 * 1024:
        cp_kwargs["vmem_limit_bytes"] = min(2 * vmem_est, 48 * 1024 * 1024)

    kernel = functools.partial(
        _hypernet_kernel, eps=eps,
        enable_layer_norm=enable_task_layer_norm, n_valid=E)

    out = pl.pallas_call(
        kernel,
        out_shape=jax.ShapeDtypeStruct((B, Ep), out_dtype),
        grid=grid,
        in_specs=[
            pl.BlockSpec((TB, K), lambda i: (i, 0)),    # x: tiled over batch
            pl.BlockSpec((K, Hp), lambda i: (0, 0)),    # weights stay resident
            pl.BlockSpec((1, Hp), lambda i: (0, 0)),
            pl.BlockSpec((Hp, Ep), lambda i: (0, 0)),
            pl.BlockSpec((1, Ep), lambda i: (0, 0)),
            pl.BlockSpec((1, Ep), lambda i: (0, 0)),
            pl.BlockSpec((1, Ep), lambda i: (0, 0)),
        ],
        out_specs=pl.BlockSpec((TB, Ep), lambda i: (i, 0)),
        compiler_params=pltpu.CompilerParams(**cp_kwargs),
        cost_estimate=cost,
    )(task_embedding, prepared["w1"], prepared["b1"], prepared["w2"],
      prepared["b2"], prepared["gamma"], prepared["beta"])

    if Ep == E:
        return out            # no post-kernel copy in the common case
    return out[:, :E]         # lane pad only (rows are already exact)


def init_params(key, task_embedding_input_size, task_hidden_size,
                task_embedding_size, dtype=jnp.float32):
    """Deterministic init mimicking nn.Linear's uniform(-1/sqrt(fan_in), +)."""
    in1 = task_embedding_input_size * 3
    k1, k2, k3, k4 = jax.random.split(key, 4)
    lim1 = 1.0 / jnp.sqrt(in1)
    lim2 = 1.0 / jnp.sqrt(task_hidden_size)
    return {
        "w1": jax.random.uniform(k1, (in1, task_hidden_size), dtype,
                                 minval=-lim1, maxval=lim1),
        "b1": jax.random.uniform(k2, (task_hidden_size,), dtype,
                                 minval=-lim1, maxval=lim1),
        "w2": jax.random.uniform(k3, (task_hidden_size, task_embedding_size),
                                 dtype, minval=-lim2, maxval=lim2),
        "b2": jax.random.uniform(k4, (task_embedding_size,), dtype,
                                 minval=-lim2, maxval=lim2),
        "gamma": jnp.ones((task_embedding_size,), dtype),
        "beta": jnp.zeros((task_embedding_size,), dtype),
    }


def _reference(x, p, eps, enable_ln):
    # Mirrors the kernel's bf16 matmul operands (f32 accumulate) so the
    # comparison only measures kernel structure, not bf16 quantization.
    bf = lambda a: a.astype(jnp.bfloat16).astype(jnp.float32)
    h = jnp.maximum(jnp.dot(bf(x), bf(p["w1"])) + p["b1"], 0.0)
    y = jnp.dot(bf(h), bf(p["w2"])) + p["b2"]
    if enable_ln:
        mean = jnp.mean(y, axis=-1, keepdims=True)
        var = jnp.mean((y - mean) ** 2, axis=-1, keepdims=True)
        y = (y - mean) / jnp.sqrt(var + eps)
        y = y * p["gamma"] + p["beta"]
    return y


if __name__ == "__main__":
    # config: task_embedding_input_size=32 (-> linear in = 96),
    #         task_hidden_size=64, task_embedding_size=128,
    #         layer_norm_eps=1e-12, enable_task_layer_norm=True
    B = 2
    task_embedding_input_size = 32
    task_hidden_size = 64
    task_embedding_size = 128
    eps = 1e-12
    enable_ln = True

    key = jax.random.PRNGKey(0)
    kp, kx, kx2 = jax.random.split(key, 3)
    params = init_params(kp, task_embedding_input_size, task_hidden_size,
                         task_embedding_size)
    prepared = prepare_params(params)

    # Small-batch case (single grid step, block larger than B).
    x = jax.random.normal(kx, (B, task_embedding_input_size * 3), jnp.float32)
    out = task_embedding_hypernet(x, prepared, eps=eps,
                                  enable_task_layer_norm=enable_ln)
    out = jax.block_until_ready(out)
    ref = _reference(x, params, eps, enable_ln)
    assert out.shape == (B, task_embedding_size)
    assert jnp.allclose(out, ref, atol=2e-3, rtol=2e-3), "mismatch vs reference"

    # Ragged multi-step grid case (exercises dropped OOB writes of last block).
    B2 = 20
    x2 = jax.random.normal(kx2, (B2, task_embedding_input_size * 3),
                           jnp.float32)
    out2 = task_embedding_hypernet(x2, prepared, eps=eps,
                                   enable_task_layer_norm=enable_ln,
                                   block_b=8)
    out2 = jax.block_until_ready(out2)
    ref2 = _reference(x2, params, eps, enable_ln)
    assert out2.shape == (B2, task_embedding_size)
    assert jnp.allclose(out2, ref2, atol=2e-3, rtol=2e-3), "ragged mismatch"

    print("KERNEL_OK")
</pallas_src>

<mosaic_0001>
module attributes {stable_mosaic.version = 11 : i64} {
  func.func @_hypernet_kernel(%arg0: i32, %arg1: memref<8x96xf32, #tpu.memory_space<vmem>>, %arg2: memref<96x128xbf16, #tpu.memory_space<vmem>>, %arg3: memref<1x128xf32, #tpu.memory_space<vmem>>, %arg4: memref<128x128xbf16, #tpu.memory_space<vmem>>, %arg5: memref<1x128xf32, #tpu.memory_space<vmem>>, %arg6: memref<1x128xf32, #tpu.memory_space<vmem>>, %arg7: memref<1x128xf32, #tpu.memory_space<vmem>>, %arg8: memref<8x128xf32, #tpu.memory_space<vmem>>) attributes {dimension_semantics = [#tpu.dimension_semantics<parallel>], iteration_bounds = array<i64: 1>, scalar_prefetch = 0 : i64, scratch_operands = 0 : i64, tpu.core_type = #tpu.core_type<tc>, window_params = [{transform_indices = @transform_0, window_bounds = array<i64: 8, 96>}, {pipeline_mode = #tpu.pipeline_mode<synchronous>, transform_indices = @transform_1, window_bounds = array<i64: 96, 128>}, {pipeline_mode = #tpu.pipeline_mode<synchronous>, transform_indices = @transform_2, window_bounds = array<i64: 1, 128>}, {pipeline_mode = #tpu.pipeline_mode<synchronous>, transform_indices = @transform_3, window_bounds = array<i64: 128, 128>}, {pipeline_mode = #tpu.pipeline_mode<synchronous>, transform_indices = @transform_4, window_bounds = array<i64: 1, 128>}, {pipeline_mode = #tpu.pipeline_mode<synchronous>, transform_indices = @transform_5, window_bounds = array<i64: 1, 128>}, {pipeline_mode = #tpu.pipeline_mode<synchronous>, transform_indices = @transform_6, window_bounds = array<i64: 1, 128>}, {transform_indices = @transform_7, window_bounds = array<i64: 8, 128>}]} {
    %c0 = arith.constant 0 : index
    %c0_0 = arith.constant 0 : index
    %0 = vector.load %arg1[%c0, %c0_0] : memref<8x96xf32, #tpu.memory_space<vmem>>, vector<8x96xf32>
    %1 = arith.truncf %0 : vector<8x96xf32> to vector<8x96xbf16>
    %c0_1 = arith.constant 0 : index
    %c0_2 = arith.constant 0 : index
    %2 = vector.load %arg2[%c0_1, %c0_2] : memref<96x128xbf16, #tpu.memory_space<vmem>>, vector<96x128xbf16>
    %cst = arith.constant dense<0.000000e+00> : vector<8x128xf32>
    %3 = tpu.matmul %1, %2, %cst {dimension_numbers = #tpu.dot_dimension_numbers<[1], [0], [0], [1], [0, 0, 1, 1], [], []>} : vector<8x96xbf16>, vector<96x128xbf16>, vector<8x128xf32> -> vector<8x128xf32>
    %c0_3 = arith.constant 0 : index
    %c0_4 = arith.constant 0 : index
    %4 = vector.load %arg3[%c0_3, %c0_4] : memref<1x128xf32, #tpu.memory_space<vmem>>, vector<1x128xf32>
    %5 = vector.broadcast %4 : vector<1x128xf32> to vector<8x128xf32>
    %6 = arith.addf %3, %5 : vector<8x128xf32>
    %cst_5 = arith.constant 0.000000e+00 : f32
    %7 = vector.broadcast %cst_5 : f32 to vector<8x128xf32>
    %8 = arith.maximumf %6, %7 : vector<8x128xf32>
    %9 = arith.truncf %8 : vector<8x128xf32> to vector<8x128xbf16>
    %c0_6 = arith.constant 0 : index
    %c0_7 = arith.constant 0 : index
    %10 = vector.load %arg4[%c0_6, %c0_7] : memref<128x128xbf16, #tpu.memory_space<vmem>>, vector<128x128xbf16>
    %cst_8 = arith.constant dense<0.000000e+00> : vector<8x128xf32>
    %11 = tpu.matmul %9, %10, %cst_8 {dimension_numbers = #tpu.dot_dimension_numbers<[1], [0], [0], [1], [0, 0, 1, 1], [], []>} : vector<8x128xbf16>, vector<128x128xbf16>, vector<8x128xf32> -> vector<8x128xf32>
    %c0_9 = arith.constant 0 : index
    %c0_10 = arith.constant 0 : index
    %12 = vector.load %arg5[%c0_9, %c0_10] : memref<1x128xf32, #tpu.memory_space<vmem>>, vector<1x128xf32>
    %13 = vector.broadcast %12 : vector<1x128xf32> to vector<8x128xf32>
    %14 = arith.addf %11, %13 : vector<8x128xf32>
    %cst_11 = arith.constant dense<0.000000e+00> : vector<8xf32>
    %15 = vector.multi_reduction <add>, %14, %cst_11 [1] : vector<8x128xf32> to vector<8xf32>
    %16 = vector.shape_cast %15 : vector<8xf32> to vector<8x1xf32>
    %cst_12 = arith.constant 1.280000e+02 : f32
    %17 = vector.broadcast %cst_12 : f32 to vector<8x1xf32>
    %18 = arith.divf %16, %17 : vector<8x1xf32>
    %19 = vector.broadcast %18 : vector<8x1xf32> to vector<8x128xf32>
    %20 = arith.subf %14, %19 : vector<8x128xf32>
    %21 = arith.mulf %20, %20 : vector<8x128xf32>
    %cst_13 = arith.constant dense<0.000000e+00> : vector<8xf32>
    %22 = vector.multi_reduction <add>, %21, %cst_13 [1] : vector<8x128xf32> to vector<8xf32>
    %23 = vector.shape_cast %22 : vector<8xf32> to vector<8x1xf32>
    %cst_14 = arith.constant 1.280000e+02 : f32
    %24 = vector.broadcast %cst_14 : f32 to vector<8x1xf32>
    %25 = arith.divf %23, %24 : vector<8x1xf32>
    %cst_15 = arith.constant 9.99999996E-13 : f32
    %26 = vector.broadcast %cst_15 : f32 to vector<8x1xf32>
    %27 = arith.addf %25, %26 : vector<8x1xf32>
    %28 = math.rsqrt %27 : vector<8x1xf32>
    %29 = vector.broadcast %28 : vector<8x1xf32> to vector<8x128xf32>
    %30 = arith.mulf %20, %29 : vector<8x128xf32>
    %c0_16 = arith.constant 0 : index
    %c0_17 = arith.constant 0 : index
    %31 = vector.load %arg6[%c0_16, %c0_17] : memref<1x128xf32, #tpu.memory_space<vmem>>, vector<1x128xf32>
    %32 = vector.broadcast %31 : vector<1x128xf32> to vector<8x128xf32>
    %33 = arith.mulf %30, %32 : vector<8x128xf32>
    %c0_18 = arith.constant 0 : index
    %c0_19 = arith.constant 0 : index
    %34 = vector.load %arg7[%c0_18, %c0_19] : memref<1x128xf32, #tpu.memory_space<vmem>>, vector<1x128xf32>
    %35 = vector.broadcast %34 : vector<1x128xf32> to vector<8x128xf32>
    %36 = arith.addf %33, %35 : vector<8x128xf32>
    %c0_20 = arith.constant 0 : index
    %c0_21 = arith.constant 0 : index
    %37 = vector.load %arg8[%c0_20, %c0_21] : memref<8x128xf32, #tpu.memory_space<vmem>>, vector<8x128xf32>
    tpu.vector_store %arg8[%c0_20, %c0_21], %36 {strides = array<i32>} : memref<8x128xf32, #tpu.memory_space<vmem>>, vector<8x128xf32>,
    return
  }
  func.func @transform_0(%arg0: i32) -> (i32, i32) {
    %c0_i32 = arith.constant 0 : i32
    %c0_i32_0 = arith.constant 0 : i32
    return %arg0, %c0_i32 : i32, i32
  }
  func.func @transform_1(%arg0: i32) -> (i32, i32) {
    %c0_i32 = arith.constant 0 : i32
    %c0_i32_0 = arith.constant 0 : i32
    %c0_i32_1 = arith.constant 0 : i32
    return %c0_i32, %c0_i32_0 : i32, i32
  }
  func.func @transform_2(%arg0: i32) -> (i32, i32) {
    %c0_i32 = arith.constant 0 : i32
    %c0_i32_0 = arith.constant 0 : i32
    %c0_i32_1 = arith.constant 0 : i32
    return %c0_i32, %c0_i32_0 : i32, i32
  }
  func.func @transform_3(%arg0: i32) -> (i32, i32) {
    %c0_i32 = arith.constant 0 : i32
    %c0_i32_0 = arith.constant 0 : i32
    %c0_i32_1 = arith.constant 0 : i32
    return %c0_i32, %c0_i32_0 : i32, i32
  }
  func.func @transform_4(%arg0: i32) -> (i32, i32) {
    %c0_i32 = arith.constant 0 : i32
    %c0_i32_0 = arith.constant 0 : i32
    %c0_i32_1 = arith.constant 0 : i32
    return %c0_i32, %c0_i32_0 : i32, i32
  }
  func.func @transform_5(%arg0: i32) -> (i32, i32) {
    %c0_i32 = arith.constant 0 : i32
    %c0_i32_0 = arith.constant 0 : i32
    %c0_i32_1 = arith.constant 0 : i32
    return %c0_i32, %c0_i32_0 : i32, i32
  }
  func.func @transform_6(%arg0: i32) -> (i32, i32) {
    %c0_i32 = arith.constant 0 : i32
    %c0_i32_0 = arith.constant 0 : i32
    %c0_i32_1 = arith.constant 0 : i32
    return %c0_i32, %c0_i32_0 : i32, i32
  }
  func.func @transform_7(%arg0: i32) -> (i32, i32) {
    %c0_i32 = arith.constant 0 : i32
    %c0_i32_0 = arith.constant 0 : i32
    return %arg0, %c0_i32 : i32, i32
  }
}

</mosaic_0001>

<bundles_post_ra>
// kernel: tpu_custom_call.1
= control target key start
LH: loop header
LB: loop body
LE: loop exit
PB: predicated region body
PF: predicated region fallthrough
CT: control target
= control target key end

     0   :  { %12 = vsyncpa [#allocation3], 0  ;;  %s643_s0 = inlined_call_operand.hbm [shape: f32[2,96], index: 0, kind: input, shape index: {}]   ;;  %s644_s1 = inlined_call_operand.hbm [shape: bf16[96,128], index: 1, kind: input, shape index: {}]   ;;  %s645_s2 = inlined_call_operand.vmem [shape: f32[1,128], index: 2, kind: input, shape index: {}]   ;;  %s646_s3 = inlined_call_operand.hbm [shape: bf16[128,128], index: 3, kind: input, shape index: {}]   ;;  %s647_s4 = inlined_call_operand.vmem [shape: f32[1,128], index: 4, kind: input, shape index: {}]   ;;  %s648_s5 = inlined_call_operand.vmem [shape: f32[1,128], index: 5, kind: input, shape index: {}]   ;;  %s649_s6 = inlined_call_operand.vmem [shape: f32[1,128], index: 6, kind: input, shape index: {}]   ;;  %s650_s7 = inlined_call_operand.hbm [shape: f32[2,128], index: 7, kind: output, shape index: {}]  }
   0x1   :  { %13 = vsyncpa [#allocation6], 0 }
   0x2   :  { %14 = vsyncpa [#allocation4], 0 }
   0x3   :  { %19 = vsyncadd [#allocation3], 96  ;;  %s521_s24 = smov [#allocation5]   ;;  %s427_s28 = scalar_lea.hbm %s644_s1, 768 }
   0x4   :  { %s32_s25 = sshll.u32 %s521_s24, 4  ;;  %p428_p0 = scmp.ne.s32.totalorder %s644_s1, %s427_s28  ;;  %s33_s25 = int_to_ptr.vmem [resolvable:$true] %s32_s25 }
   0x5   :  { %p431_p1 = scmp.lt.u32.totalorder %s427_s28, %s644_s1 }
   0x7   :  { %p433_p2 = pnand %p431_p1, %p428_p0 }
   0x9   :  { %436 = shalt.err (!%p433_p2)
}
   0xa   :  { %s437_s10 = scalar_lea.vmem %s33_s25, 768  ;;  %p442_p4 = scmp.lt.s32.totalorder %s33_s25, %s33_s25 }
   0xb   :  { %p438_p3 = scmp.ne.s32.totalorder %s33_s25, %s437_s10  ;;  %p443_p5 = scmp.lt.s32.totalorder %s437_s10, %s437_s10 }
   0xd   :  { %p444_p6 = por %p443_p5, %p442_p4 }
   0xf   :  { %p445_p7 = pnand %p444_p6, %p438_p3 }
  0x11   :  { %448 = shalt.err (!%p445_p7)
}
  0x12   :  { %s522_s11 = smov 64   ;;  %s523_s12 = smov 4  }
  0x13   :  { %38 = dma.hbm_to_vmem [thread:$0]  %s644_s1, 768, %s33_s25, [#allocation6], %s522_s11, %s522_s11, %s523_s12  }
  0x14   :  { %s524_s15 = smov [#allocation2]   ;;  %s449_s19 = scalar_lea.hbm %s643_s0, 32 }
  0x15   :  { %s20_s16 = sshll.u32 %s524_s15, 4  ;;  %p450_p8 = scmp.ne.s32.totalorder %s643_s0, %s449_s19  ;;  %s21_s16 = int_to_ptr.vmem [resolvable:$true] %s20_s16 }
  0x16   :  { %p453_p9 = scmp.lt.u32.totalorder %s449_s19, %s643_s0 }
  0x18   :  { %p455_p10 = pnand %p453_p9, %p450_p8 }
  0x1a   :  { %458 = shalt.err (!%p455_p10)
}
  0x1b   :  { %s459_s24 = scalar_lea.vmem %s21_s16, 32  ;;  %s463_s1 = scalar_lea.vmem %s21_s16, 128 }
  0x1c   :  { %p460_p11 = scmp.ne.s32.totalorder %s21_s16, %s459_s24  ;;  %p464_p12 = scmp.lt.s32.totalorder %s21_s16, %s21_s16 }
  0x1d   :  { %p465_p13 = scmp.lt.s32.totalorder %s463_s1, %s459_s24 }
  0x1f   :  { %p466_p0 = por %p465_p13, %p464_p12 }
  0x21   :  { %p467_p1 = pnand %p466_p0, %p460_p11 }
  0x23   :  { %470 = shalt.err (!%p467_p1)
}
  0x24   :  { %s525_s25 = smov 32   ;;  %s526_s26 = smov 2  }
  0x25   :  { %26 = dma.hbm_to_vmem [thread:$0]  %s643_s0, 32, %s21_s16, [#allocation3], %s525_s25, %s525_s25, %s526_s26  }
  0x26   :  { %s527_s29 = smov [#allocation7]   ;;  %s471_s10 = scalar_lea.hbm %s646_s3, 1024 }
  0x27   :  { %s46_s30 = sshll.u32 %s527_s29, 4  ;;  %p472_p2 = scmp.ne.s32.totalorder %s646_s3, %s471_s10  ;;  %s47_s30 = int_to_ptr.vmem [resolvable:$true] %s46_s30 }
  0x28   :  { %p475_p3 = scmp.lt.u32.totalorder %s471_s10, %s646_s3 }
  0x2a   :  { %p477_p4 = pnand %p475_p3, %p472_p2 }
  0x2c   :  { %480 = shalt.err (!%p477_p4)
}
  0x2d   :  { %s481_s18 = scalar_lea.vmem %s47_s30, 1024  ;;  %p486_p6 = scmp.lt.s32.totalorder %s47_s30, %s47_s30 }
  0x2e   :  { %p482_p5 = scmp.ne.s32.totalorder %s47_s30, %s481_s18  ;;  %p487_p7 = scmp.lt.s32.totalorder %s481_s18, %s481_s18 }
  0x30   :  { %p488_p8 = por %p487_p7, %p486_p6 }
  0x32   :  { %p489_p9 = pnand %p488_p8, %p482_p5 }
  0x34   :  { %492 = shalt.err (!%p489_p9)
}
  0x35   :  { %52 = dma.hbm_to_vmem [thread:$0]  %s646_s3, 1024, %s47_s30, [#allocation6], %s522_s11, %s522_s11, %s523_s12  }
  0x36   :  { %515 = dma.done.wait [#allocation3], 128  }
  0x37   :  { %516 = vsyncadd [#allocation3], 4294967168 }
  0x38   :  { %517 = dma.done.wait [#allocation6], 1792  }
  0x39   :  { %518 = vsyncadd [#allocation6], 4294965504  ;;  %v528_v0 = vmov 0.0   ;;  %vm529_vm0 = vmmov 0   ;;  %v411_v1 = vld [vmem:[#allocation5] sm:$0xff]   ;;  %v412_v2 = vld [vmem:[#allocation5 + $0x8] sm:$0xff]  }
  0x3a   :  { %365 = vmatprep.subr.bf16.mxu0 %v528_v0  ;;  %377 = vmatprep.mubr.msk.bf16.mxu0 %vm529_vm0, %v528_v0  ;;  %v413_v3 = vld [vmem:[#allocation5 + $0x10] sm:$0xff]   ;;  %v418_v5 = vld [vmem:[#allocation7 + $0x8] sm:$0xff]   ;;  %v419_v7 = vld [vmem:[#allocation7 + $0x10] sm:$0xff]   ;;  %vm126_vm1 = vcmask 785408  }
  0x3b   :  { %381 = vmatprep.subr.bf16.mxu1 %v528_v0  ;;  %397 = vmatprep.mubr.msk.bf16.mxu1 %vm529_vm0, %v528_v0  ;;  %v417_v4 = vld [vmem:[#allocation7] sm:$0xff]   ;;  %v414_v6 = vld [vmem:[#allocation5 + $0x18] sm:$0xff]   ;;  %v415_v8 = vld [vmem:[#allocation5 + $0x20] sm:$0xff]  }
  0x3c   :  { %366 = vmatpush3.bf16.msra.mxu0 %v411_v1  ;;  %382 = vmatpush3.bf16.msra.mxu1 %v417_v4  ;;  %v420_v9 = vld [vmem:[#allocation7 + $0x18] sm:$0xff]   ;;  %v69_v11 = vld [vmem:[#allocation2] sm:$0xff]  ;;  %v421_v13 = vld [vmem:[#allocation7 + $0x20] sm:$0xff]  }
  0x3d   :  { %367 = vmatprep.subr.bf16.mxu0 %v528_v0  ;;  %383 = vmatprep.subr.bf16.mxu1 %v528_v0  ;;  %v416_v10 = vld [vmem:[#allocation5 + $0x28] sm:$0xff]   ;;  %v70_v12 = vpack.c.bf16 %v69_v11, %v69_v11  ;;  %v422_v14 = vld [vmem:[#allocation7 + $0x28] sm:$0xff]   ;;  %v423_v15 = vld [vmem:[#allocation7 + $0x30] sm:$0xff]  }
  0x3e   :  { %v424_v16 = vld [vmem:[#allocation7 + $0x38] sm:$0xff]   ;;  %v330_v17 = vld [vmem:[%s645_s2] ss:$0 sm:$0xff] }
  0x3f   :  { %v338_v25 = vld [vmem:[%s647_s4] ss:$0 sm:$0xff] }
  0x40   :  { %368 = vmatpush3.bf16.msra.mxu0 %v412_v2  ;;  %384 = vmatpush3.bf16.msra.mxu1 %v418_v5  ;;  %v347_v39 = vld [vmem:[%s648_s5] ss:$0 sm:$0xff] }
  0x41   :  { %369 = vmatprep.subr.bf16.mxu0 %v528_v0  ;;  %385 = vmatprep.subr.bf16.mxu1 %v528_v0  ;;  %v348_v41 = vld [vmem:[%s649_s6] ss:$0 sm:$0xff] }
  0x44   :  { %370 = vmatpush3.bf16.msra.mxu0 %v413_v3  ;;  %386 = vmatpush3.bf16.msra.mxu1 %v419_v7 }
  0x45   :  { %371 = vmatprep.subr.bf16.mxu0 %v528_v0  ;;  %387 = vmatprep.subr.bf16.mxu1 %v528_v0 }
  0x48   :  { %372 = vmatpush3.bf16.msra.mxu0 %v414_v6  ;;  %388 = vmatpush3.bf16.msra.mxu1 %v420_v9 }
  0x49   :  { %373 = vmatprep.subr.bf16.mxu0 %v528_v0  ;;  %389 = vmatprep.subr.bf16.mxu1 %v528_v0 }
  0x4c   :  { %374 = vmatpush3.bf16.msra.mxu0 %v415_v8  ;;  %390 = vmatpush3.bf16.msra.mxu1 %v421_v13 }
  0x4d   :  { %375 = vmatprep.subr.bf16.mxu0 %v528_v0  ;;  %391 = vmatprep.subr.bf16.mxu1 %v528_v0 }
  0x50   :  { %376 = vmatpush3.bf16.msra.mxu0 %v416_v10  ;;  %392 = vmatpush3.bf16.msra.mxu1 %v422_v14 }
  0x51   :  { %393 = vmatprep.subr.bf16.mxu1 %v528_v0 }
  0x53   :  { %378 = vmatmul.mubr.msk.bf16.vlgmr.msra.gmra.mrb[0].mxu0 %vm126_vm1, %v70_v12 }
  0x54   :  { %394 = vmatpush3.bf16.msra.mxu1 %v423_v15 }
  0x55   :  { %395 = vmatprep.subr.bf16.mxu1 %v528_v0 }
  0x58   :  { %396 = vmatpush3.bf16.msra.mxu1 %v424_v16 }
 0x126   :  { %v164_v18 = vpop.f32.mrb[0].mxu0 }
 0x127   :  { %v165_v19 = vadd.f32 %v330_v17, %v164_v18  ;;  %v379_v20 = vpop.f32.mrb[1].mxu0 }
 0x128   :  { %v167_v21 = vpop.f32.mrb[2].mxu0 }
 0x129   :  { %v170_v22 = vmax.f32 %v165_v19, 0.0  ;;  %v380_v23 = vpop.f32.mrb[3].mxu0 }
 0x12b   :  { %v171_v24 = vpack.c.bf16 %v170_v22, %v170_v22 }
 0x12d   :  { %398 = vmatmul.mubr.bf16.vlgmr.msra.gmra.mrb[0].mxu1 %v171_v24 }
 0x200   :  { %v277_v26 = vpop.f32.mrb[0].mxu1 }
 0x201   :  { %v278_v27 = vadd.f32 %v338_v25, %v277_v26  ;;  %v399_v28 = vpop.f32.mrb[1].mxu1 }
 0x202   :  { %v280_v29 = vpop.f32.mrb[2].mxu1 }
 0x203   :  { %283 = vadd.xlane.f32.xlu0 %v278_v27  ;;  %v400_v30 = vpop.f32.mrb[3].mxu1 }
 0x290   :  { %v284_v31 = vpop.xlane.xlu0 %283 }
 0x291   :  { %v286_v32 = vmul.f32 0.0078125, %v284_v31 }
 0x293   :  { %v287_v33 = vsub.f32 %v278_v27, %v286_v32 }
 0x295   :  { %v288_v34 = vmul.f32 %v287_v33, %v287_v33 }
 0x297   :  { %289 = vadd.xlane.f32.xlu0 %v288_v34 }
 0x324   :  { %v290_v35 = vpop.xlane.xlu0 %289 }
 0x325   :  { %v291_v36 = vmul.f32 0.0078125, %v290_v35 }
 0x327   :  { %v292_v37 = vadd.f32 1e-12, %v291_v36 }
 0x329   :  { %425 = vrsqrt.f32 %v292_v37 }
 0x333   :  { %v426_v38 = vpop.eup %425 }
 0x334   :  { %v294_v40 = vmul.f32 %v426_v38, %v287_v33 }
 0x336   :  { %v302_v42 = vmul.f32 %v347_v39, %v294_v40 }
 0x338   :  { %v310_v43 = vadd.f32 %v348_v41, %v302_v42 }
 0x33a   :  { %311 = vst [vmem:[#allocation8] sm:$0xff] %v310_v43 }
 0x33b   :  { %316 = vsyncadd [#allocation4], 96  ;;  %s530_s22 = smov [#allocation8]  }
 0x33c   :  { %s317_s23 = sshll.u32 %s530_s22, 4  ;;  %s318_s23 = int_to_ptr.vmem [resolvable:$true] %s317_s23 }
 0x33d   :  { %s493_s24 = scalar_lea.vmem %s318_s23, 32  ;;  %s497_s1 = scalar_lea.vmem %s318_s23, 128 }
 0x33e   :  { %p494_p10 = scmp.ne.s32.totalorder %s318_s23, %s493_s24  ;;  %p498_p11 = scmp.lt.s32.totalorder %s318_s23, %s318_s23 }
 0x33f   :  { %p499_p12 = scmp.lt.s32.totalorder %s497_s1, %s493_s24 }
 0x341   :  { %p500_p13 = por %p499_p12, %p498_p11 }
 0x343   :  { %p501_p0 = pnand %p500_p13, %p494_p10 }
 0x345   :  { %504 = shalt.err (!%p501_p0)
}
 0x346   :  { %s505_s28 = scalar_lea.hbm %s650_s7, 32 }
 0x347   :  { %p506_p1 = scmp.ne.s32.totalorder %s650_s7, %s505_s28  ;;  %p509_p2 = scmp.lt.u32.totalorder %s505_s28, %s650_s7 }
 0x349   :  { %p511_p3 = pnand %p509_p2, %p506_p1 }
 0x34b   :  { %514 = shalt.err (!%p511_p3)
}
 0x34c   :  { %323 = dma.vmem_to_hbm [thread:$0]  %s318_s23, 32, %s650_s7, [#allocation4], %s525_s25, %s525_s25, %s526_s26  }
 0x34d   :  { %519 = dma.done.wait [#allocation4], 128  }
 0x34e   :  { %520 = vsyncadd [#allocation4], 4294967168 }
 0x34f   :  { %327 = vsyncpa [#allocation3], 1 }
 0x350   :  { %328 = vsyncpa [#allocation6], 1 }
 0x351   :  { %329 = vsyncpa [#allocation4], 1 }

</bundles_post_ra>
